<compile_context>
chip_gen: v7x
topology: tpu7x:2x2x1
jax: 0.10.0
libtpu: 0.0.40
codegen_flags: <defaults>
</compile_context>

<pallas_src>
import functools

import jax
import jax.numpy as jnp
from jax.experimental import pallas as pl
from jax.experimental.pallas import tpu as pltpu

OUT_PAD = 128          # lane-dense padded output width: [logits | value | zeros]
_LEAKY_SLOPE = 0.01    # nn.LeakyReLU() default


def _round_up(n, m):
    return ((n + m - 1) // m) * m


def _leaky_relu(x):
    # max(x, 0.01*x) == LeakyReLU(x) for slope in (0, 1)
    return jnp.maximum(x, _LEAKY_SLOPE * x)


def _is_v5e():
    """Best-effort detection of TPU v5e (128-wide MXU) for head-2 un-fusion."""
    try:
        kind = jax.devices()[0].device_kind.lower()
        return ("v5 lite" in kind) or ("v5e" in kind) or ("v5litepod" in kind)
    except Exception:
        return False


def _poker_net_kernel(
    x_ref,
    # shared trunk (weights bf16, biases f32)
    sw1, sb1, sw2, sb2, sw3, sb3,
    # fused heads (policy | value)
    hw1, hb1, hw2, hb2, hw3, hb3,
    # output: (TB, OUT_PAD) slab, cols [0, A) = logits, col A = value
    out_ref,
    *, split_head2,
):
    bf16 = jnp.bfloat16
    f32 = jnp.float32

    x = x_ref[...].astype(bf16)

    # ---- shared trunk: Linear -> LeakyReLU (x3), bf16 MXU, f32 epilogue ----
    h = _leaky_relu(jnp.dot(x, sw1[...], preferred_element_type=f32) + sb1[...])
    h = _leaky_relu(jnp.dot(h.astype(bf16), sw2[...], preferred_element_type=f32) + sb2[...])
    h = _leaky_relu(jnp.dot(h.astype(bf16), sw3[...], preferred_element_type=f32) + sb3[...])

    # ---- fused policy+value heads ----
    # head layer 1: h -> [p1 | v1]
    hv = _leaky_relu(jnp.dot(h.astype(bf16), hw1[...], preferred_element_type=f32) + hb1[...])
    hvb = hv.astype(bf16)

    # head layer 2: block-diagonal [p1 | v1] -> [p2 | v2]
    if split_head2:
        # v5e: two lane-full 128-wide matmuls instead of one half-zero one.
        hidden = hw2.shape[0] // 2
        half = hw2.shape[1] // 2
        w2 = hw2[...]
        p2 = jnp.dot(hvb[:, :hidden], w2[:hidden, :half], preferred_element_type=f32)
        v2 = jnp.dot(hvb[:, hidden:], w2[hidden:, half:], preferred_element_type=f32)
        hv2 = jnp.concatenate([p2, v2], axis=1) + hb2[...]
    else:
        hv2 = jnp.dot(hvb, hw2[...], preferred_element_type=f32) + hb2[...]
    hv2 = _leaky_relu(hv2)

    # head layer 3: single lane-dense (2*half, OUT_PAD) matmul -> unmasked store
    out_ref[...] = jnp.dot(hv2.astype(bf16), hw3[...], preferred_element_type=f32) + hb3[...]


@functools.partial(jax.jit, static_argnames=("action_dim", "block_batch", "split_head2"))
def _poker_net_forward_jit(x, fused_params, action_dim, block_batch, split_head2):
    (sw1, sb1, sw2, sb2, sw3, sb3, hw1, hb1, hw2, hb2, hw3, hb3) = fused_params
    B, F = x.shape
    Fp = sw1.shape[0]                      # feature dim already 128-padded in fuse_params
    if F < Fp:
        x = jnp.pad(x, ((0, 0), (0, Fp - F)))

    # Batch tile: big tiles amortize the ~0.35us per-grid-step overhead.  If
    # the grid would only have one step, halve the tile so "parallel" batch
    # semantics can still shard across v7x's two TensorCores.
    TB = min(block_batch, _round_up(max(B, 1), 8))
    Bp = _round_up(B, TB)
    if Bp // TB == 1 and TB >= 16:
        TB = _round_up(TB // 2, 8)
        Bp = _round_up(B, TB)
    if Bp != B:
        x = jnp.pad(x, ((0, Bp - B), (0, 0)))

    grid = (Bp // TB,)
    x_spec = pl.BlockSpec((TB, Fp), lambda i: (i, 0))
    # Weights / biases: full-array blocks, constant index_map -> DMA'd once,
    # VMEM-resident across grid iterations; only activations stream.
    w_specs = [pl.BlockSpec(p.shape, lambda i: (0, 0)) for p in fused_params]
    out_spec = pl.BlockSpec((TB, OUT_PAD), lambda i: (i, 0))

    # Advisory cost estimate for XLA's scheduler around the custom call.
    H = sw1.shape[1]
    flops = 2 * Bp * (Fp * H + H * H + H * H
                      + H * hw1.shape[1]
                      + hw2.shape[0] * hw2.shape[1]
                      + hw3.shape[0] * OUT_PAD)
    param_bytes = sum(int(p.size) * p.dtype.itemsize for p in fused_params)
    bytes_accessed = Bp * Fp * 4 + Bp * OUT_PAD * 4 + param_bytes
    cost = pl.CostEstimate(flops=int(flops), transcendentals=0,
                           bytes_accessed=int(bytes_accessed))

    # VMEM budget: double-buffered x/out tiles + resident bf16 weights + slack.
    needed = 2 * TB * Fp * 4 + 2 * TB * OUT_PAD * 4 + param_bytes + (2 << 20)
    vmem_limit = int(min(max(needed, 32 << 20), 64 << 20))

    kernel = functools.partial(_poker_net_kernel, split_head2=split_head2)
    out = pl.pallas_call(
        kernel,
        out_shape=jax.ShapeDtypeStruct((Bp, OUT_PAD), jnp.float32),
        grid=grid,
        in_specs=[x_spec] + w_specs,
        out_specs=out_spec,
        compiler_params=pltpu.CompilerParams(
            dimension_semantics=("parallel",),
            vmem_limit_bytes=vmem_limit),
        cost_estimate=cost,
    )(x, *fused_params)

    logits = out[:B, :action_dim]
    values = out[:B, action_dim:action_dim + 1]
    return logits, values


def poker_net_forward(x, fused_params, action_dim, block_batch=1024, split_head2=None):
    """Full forward pass. `fused_params` comes from `fuse_params(...)`.

    Returns (action_logits [B, action_dim], state_values [B, 1])."""
    if split_head2 is None:
        split_head2 = _is_v5e()   # un-fused head-2 only pays off on v5e's 128-wide MXU
    return _poker_net_forward_jit(x, tuple(fused_params), action_dim,
                                  block_batch, bool(split_head2))


# ----------------------------------------------------------------------------
# Parameter construction (matches EnhancedPokerNetwork.__init__ semantics)
# ----------------------------------------------------------------------------

def _orthogonal(key, shape, gain):
    """Orthogonal init (nn.init.orthogonal_ semantics) scaled by `gain`."""
    rows, cols = shape
    flat_shape = (max(rows, cols), min(rows, cols))
    a = jax.random.normal(key, flat_shape, dtype=jnp.float32)
    q, r = jnp.linalg.qr(a)
    d = jnp.sign(jnp.diag(r))
    q = q * d[None, :]
    if rows < cols:
        q = q.T
    return gain * q[:rows, :cols]


def init_params(key, input_dim, action_dim, hidden_dim=256):
    """Per-layer params: weights as [in, out] (transpose of nn.Linear), biases [1, out]."""
    gain = jnp.sqrt(2.0)
    half = hidden_dim // 2
    layer_dims = [
        # shared
        (input_dim, hidden_dim), (hidden_dim, hidden_dim), (hidden_dim, hidden_dim),
        # policy
        (hidden_dim, hidden_dim), (hidden_dim, half), (half, action_dim),
        # value
        (hidden_dim, hidden_dim), (hidden_dim, half), (half, 1),
    ]
    params = []
    keys = jax.random.split(key, len(layer_dims))
    for k, (din, dout) in zip(keys, layer_dims):
        w_pt = _orthogonal(k, (dout, din), gain)           # PyTorch layout (out, in)
        params.append(jnp.asarray(w_pt.T, dtype=jnp.float32))
        params.append(jnp.zeros((1, dout), dtype=jnp.float32))
    return tuple(params)


def fuse_params(params, action_dim, out_pad=OUT_PAD, weight_dtype=jnp.bfloat16):
    """Fuses the policy/value heads into three wide, lane-dense matmuls,
    pads the feature dim to a multiple of 128, and stores weights in bf16
    (biases stay f32 for the f32-accumulator epilogue)."""
    (sw1, sb1, sw2, sb2, sw3, sb3,
     pw1, pb1, pw2, pb2, pw3, pb3,
     vw1, vb1, vw2, vb2, vw3, vb3) = params
    input_dim, hidden = sw1.shape
    half = pw2.shape[1]
    assert action_dim + 1 <= out_pad, "action_dim+1 must fit in the padded output width"

    # Zero-pad feature rows of sw1 to a multiple of 128 (lane-dense x loads).
    f_pad = _round_up(input_dim, 128)
    if f_pad != input_dim:
        sw1 = jnp.pad(sw1, ((0, f_pad - input_dim), (0, 0)))

    # head layer 1: h -> [p1 | v1]
    hw1 = jnp.concatenate([pw1, vw1], axis=1)                       # (H, 2H)
    hb1 = jnp.concatenate([pb1, vb1], axis=1)                       # (1, 2H)

    # head layer 2: block-diagonal, [p1 | v1] -> [p2 | v2]
    hw2 = jnp.zeros((2 * hidden, 2 * half), jnp.float32)
    hw2 = hw2.at[:hidden, :half].set(pw2)
    hw2 = hw2.at[hidden:, half:].set(vw2)
    hb2 = jnp.concatenate([pb2, vb2], axis=1)                       # (1, 2*half)

    # head layer 3: one lane-dense (2*half, out_pad) weight
    hw3 = jnp.zeros((2 * half, out_pad), jnp.float32)
    hw3 = hw3.at[:half, :action_dim].set(pw3)
    hw3 = hw3.at[half:, action_dim:action_dim + 1].set(vw3)
    hb3 = jnp.zeros((1, out_pad), jnp.float32)
    hb3 = hb3.at[:, :action_dim].set(pb3)
    hb3 = hb3.at[:, action_dim:action_dim + 1].set(vb3)

    weights = [w.astype(weight_dtype) for w in (sw1, sw2, sw3, hw1, hw2, hw3)]
    biases = [b.astype(jnp.float32) for b in (sb1, sb2, sb3, hb1, hb2, hb3)]
    return (weights[0], biases[0], weights[1], biases[1], weights[2], biases[2],
            weights[3], biases[3], weights[4], biases[4], weights[5], biases[5])


if __name__ == "__main__":
    # Small, forward-consistent shapes.
    batch = 2
    input_dim = 16
    action_dim = 8
    hidden_dim = 32

    key = jax.random.PRNGKey(0)
    k_params, k_x = jax.random.split(key)
    params = init_params(k_params, input_dim, action_dim, hidden_dim)
    fused = fuse_params(params, action_dim)
    x = jax.random.normal(k_x, (batch, input_dim), dtype=jnp.float32)

    # Default path (fused block-diag head-2; auto-unfused on v5e).
    logits, values = poker_net_forward(x, fused, action_dim)
    jax.block_until_ready((logits, values))

    # Explicitly exercise the v5e-targeted un-fused head-2 path as well.
    logits_s, values_s = poker_net_forward(x, fused, action_dim, split_head2=True)
    jax.block_until_ready((logits_s, values_s))

    # Pure-JAX f32 reference (unfused) for a sanity check of the kernel math.
    def ref_forward(x, params):
        def lin(h, i):
            return jnp.dot(h, params[2 * i]) + params[2 * i + 1]
        lrelu = lambda t: jnp.where(t > 0, t, 0.01 * t)
        h = lrelu(lin(x, 0)); h = lrelu(lin(h, 1)); h = lrelu(lin(h, 2))
        p = lrelu(lin(h, 3)); p = lrelu(lin(p, 4)); p = lin(p, 5)
        v = lrelu(lin(h, 6)); v = lrelu(lin(v, 7)); v = lin(v, 8)
        return p, v

    ref_logits, ref_values = ref_forward(x, params)
    assert logits.shape == (batch, action_dim)
    assert values.shape == (batch, 1)
    # bf16 matmul operands (f32 accumulation) -> looser tolerance vs f32 ref.
    assert jnp.allclose(logits, ref_logits, atol=5e-2, rtol=5e-2)
    assert jnp.allclose(values, ref_values, atol=5e-2, rtol=5e-2)
    assert jnp.allclose(logits_s, ref_logits, atol=5e-2, rtol=5e-2)
    assert jnp.allclose(values_s, ref_values, atol=5e-2, rtol=5e-2)

    print("KERNEL_OK")
</pallas_src>

<mosaic_0001>
module attributes {stable_mosaic.version = 11 : i64} {
  func.func @_poker_net_kernel(%arg0: i32, %arg1: memref<8x128xf32, #tpu.memory_space<vmem>>, %arg2: memref<128x32xbf16, #tpu.memory_space<vmem>>, %arg3: memref<1x32xf32, #tpu.memory_space<vmem>>, %arg4: memref<32x32xbf16, #tpu.memory_space<vmem>>, %arg5: memref<1x32xf32, #tpu.memory_space<vmem>>, %arg6: memref<32x32xbf16, #tpu.memory_space<vmem>>, %arg7: memref<1x32xf32, #tpu.memory_space<vmem>>, %arg8: memref<32x64xbf16, #tpu.memory_space<vmem>>, %arg9: memref<1x64xf32, #tpu.memory_space<vmem>>, %arg10: memref<64x32xbf16, #tpu.memory_space<vmem>>, %arg11: memref<1x32xf32, #tpu.memory_space<vmem>>, %arg12: memref<32x128xbf16, #tpu.memory_space<vmem>>, %arg13: memref<1x128xf32, #tpu.memory_space<vmem>>, %arg14: memref<8x128xf32, #tpu.memory_space<vmem>>) attributes {dimension_semantics = [#tpu.dimension_semantics<parallel>], iteration_bounds = array<i64: 1>, scalar_prefetch = 0 : i64, scratch_operands = 0 : i64, tpu.core_type = #tpu.core_type<tc>, window_params = [{transform_indices = @transform_0, window_bounds = array<i64: 8, 128>}, {pipeline_mode = #tpu.pipeline_mode<synchronous>, transform_indices = @transform_1, window_bounds = array<i64: 128, 32>}, {pipeline_mode = #tpu.pipeline_mode<synchronous>, transform_indices = @transform_2, window_bounds = array<i64: 1, 32>}, {pipeline_mode = #tpu.pipeline_mode<synchronous>, transform_indices = @transform_3, window_bounds = array<i64: 32, 32>}, {pipeline_mode = #tpu.pipeline_mode<synchronous>, transform_indices = @transform_4, window_bounds = array<i64: 1, 32>}, {pipeline_mode = #tpu.pipeline_mode<synchronous>, transform_indices = @transform_5, window_bounds = array<i64: 32, 32>}, {pipeline_mode = #tpu.pipeline_mode<synchronous>, transform_indices = @transform_6, window_bounds = array<i64: 1, 32>}, {pipeline_mode = #tpu.pipeline_mode<synchronous>, transform_indices = @transform_7, window_bounds = array<i64: 32, 64>}, {pipeline_mode = #tpu.pipeline_mode<synchronous>, transform_indices = @transform_8, window_bounds = array<i64: 1, 64>}, {pipeline_mode = #tpu.pipeline_mode<synchronous>, transform_indices = @transform_9, window_bounds = array<i64: 64, 32>}, {pipeline_mode = #tpu.pipeline_mode<synchronous>, transform_indices = @transform_10, window_bounds = array<i64: 1, 32>}, {pipeline_mode = #tpu.pipeline_mode<synchronous>, transform_indices = @transform_11, window_bounds = array<i64: 32, 128>}, {pipeline_mode = #tpu.pipeline_mode<synchronous>, transform_indices = @transform_12, window_bounds = array<i64: 1, 128>}, {transform_indices = @transform_13, window_bounds = array<i64: 8, 128>}]} {
    %c0 = arith.constant 0 : index
    %c0_0 = arith.constant 0 : index
    %0 = vector.load %arg1[%c0, %c0_0] : memref<8x128xf32, #tpu.memory_space<vmem>>, vector<8x128xf32>
    %1 = arith.truncf %0 : vector<8x128xf32> to vector<8x128xbf16>
    %c0_1 = arith.constant 0 : index
    %c0_2 = arith.constant 0 : index
    %2 = vector.load %arg2[%c0_1, %c0_2] : memref<128x32xbf16, #tpu.memory_space<vmem>>, vector<128x32xbf16>
    %cst = arith.constant dense<0.000000e+00> : vector<8x32xf32>
    %3 = tpu.matmul %1, %2, %cst {dimension_numbers = #tpu.dot_dimension_numbers<[1], [0], [0], [1], [0, 0, 1, 1], [], []>} : vector<8x128xbf16>, vector<128x32xbf16>, vector<8x32xf32> -> vector<8x32xf32>
    %c0_3 = arith.constant 0 : index
    %c0_4 = arith.constant 0 : index
    %4 = vector.load %arg3[%c0_3, %c0_4] : memref<1x32xf32, #tpu.memory_space<vmem>>, vector<1x32xf32>
    %5 = vector.broadcast %4 : vector<1x32xf32> to vector<8x32xf32>
    %6 = arith.addf %3, %5 : vector<8x32xf32>
    %cst_5 = arith.constant 0.00999999977 : f32
    %7 = vector.broadcast %cst_5 : f32 to vector<8x32xf32>
    %8 = arith.mulf %7, %6 : vector<8x32xf32>
    %9 = arith.maximumf %6, %8 : vector<8x32xf32>
    %10 = arith.truncf %9 : vector<8x32xf32> to vector<8x32xbf16>
    %c0_6 = arith.constant 0 : index
    %c0_7 = arith.constant 0 : index
    %11 = vector.load %arg4[%c0_6, %c0_7] : memref<32x32xbf16, #tpu.memory_space<vmem>>, vector<32x32xbf16>
    %cst_8 = arith.constant dense<0.000000e+00> : vector<8x32xf32>
    %12 = tpu.matmul %10, %11, %cst_8 {dimension_numbers = #tpu.dot_dimension_numbers<[1], [0], [0], [1], [0, 0, 1, 1], [], []>} : vector<8x32xbf16>, vector<32x32xbf16>, vector<8x32xf32> -> vector<8x32xf32>
    %c0_9 = arith.constant 0 : index
    %c0_10 = arith.constant 0 : index
    %13 = vector.load %arg5[%c0_9, %c0_10] : memref<1x32xf32, #tpu.memory_space<vmem>>, vector<1x32xf32>
    %14 = vector.broadcast %13 : vector<1x32xf32> to vector<8x32xf32>
    %15 = arith.addf %12, %14 : vector<8x32xf32>
    %cst_11 = arith.constant 0.00999999977 : f32
    %16 = vector.broadcast %cst_11 : f32 to vector<8x32xf32>
    %17 = arith.mulf %16, %15 : vector<8x32xf32>
    %18 = arith.maximumf %15, %17 : vector<8x32xf32>
    %19 = arith.truncf %18 : vector<8x32xf32> to vector<8x32xbf16>
    %c0_12 = arith.constant 0 : index
    %c0_13 = arith.constant 0 : index
    %20 = vector.load %arg6[%c0_12, %c0_13] : memref<32x32xbf16, #tpu.memory_space<vmem>>, vector<32x32xbf16>
    %cst_14 = arith.constant dense<0.000000e+00> : vector<8x32xf32>
    %21 = tpu.matmul %19, %20, %cst_14 {dimension_numbers = #tpu.dot_dimension_numbers<[1], [0], [0], [1], [0, 0, 1, 1], [], []>} : vector<8x32xbf16>, vector<32x32xbf16>, vector<8x32xf32> -> vector<8x32xf32>
    %c0_15 = arith.constant 0 : index
    %c0_16 = arith.constant 0 : index
    %22 = vector.load %arg7[%c0_15, %c0_16] : memref<1x32xf32, #tpu.memory_space<vmem>>, vector<1x32xf32>
    %23 = vector.broadcast %22 : vector<1x32xf32> to vector<8x32xf32>
    %24 = arith.addf %21, %23 : vector<8x32xf32>
    %cst_17 = arith.constant 0.00999999977 : f32
    %25 = vector.broadcast %cst_17 : f32 to vector<8x32xf32>
    %26 = arith.mulf %25, %24 : vector<8x32xf32>
    %27 = arith.maximumf %24, %26 : vector<8x32xf32>
    %28 = arith.truncf %27 : vector<8x32xf32> to vector<8x32xbf16>
    %c0_18 = arith.constant 0 : index
    %c0_19 = arith.constant 0 : index
    %29 = vector.load %arg8[%c0_18, %c0_19] : memref<32x64xbf16, #tpu.memory_space<vmem>>, vector<32x64xbf16>
    %cst_20 = arith.constant dense<0.000000e+00> : vector<8x64xf32>
    %30 = tpu.matmul %28, %29, %cst_20 {dimension_numbers = #tpu.dot_dimension_numbers<[1], [0], [0], [1], [0, 0, 1, 1], [], []>} : vector<8x32xbf16>, vector<32x64xbf16>, vector<8x64xf32> -> vector<8x64xf32>
    %c0_21 = arith.constant 0 : index
    %c0_22 = arith.constant 0 : index
    %31 = vector.load %arg9[%c0_21, %c0_22] : memref<1x64xf32, #tpu.memory_space<vmem>>, vector<1x64xf32>
    %32 = vector.broadcast %31 : vector<1x64xf32> to vector<8x64xf32>
    %33 = arith.addf %30, %32 : vector<8x64xf32>
    %cst_23 = arith.constant 0.00999999977 : f32
    %34 = vector.broadcast %cst_23 : f32 to vector<8x64xf32>
    %35 = arith.mulf %34, %33 : vector<8x64xf32>
    %36 = arith.maximumf %33, %35 : vector<8x64xf32>
    %37 = arith.truncf %36 : vector<8x64xf32> to vector<8x64xbf16>
    %c0_24 = arith.constant 0 : index
    %c0_25 = arith.constant 0 : index
    %38 = vector.load %arg10[%c0_24, %c0_25] : memref<64x32xbf16, #tpu.memory_space<vmem>>, vector<64x32xbf16>
    %cst_26 = arith.constant dense<0.000000e+00> : vector<8x32xf32>
    %39 = tpu.matmul %37, %38, %cst_26 {dimension_numbers = #tpu.dot_dimension_numbers<[1], [0], [0], [1], [0, 0, 1, 1], [], []>} : vector<8x64xbf16>, vector<64x32xbf16>, vector<8x32xf32> -> vector<8x32xf32>
    %c0_27 = arith.constant 0 : index
    %c0_28 = arith.constant 0 : index
    %40 = vector.load %arg11[%c0_27, %c0_28] : memref<1x32xf32, #tpu.memory_space<vmem>>, vector<1x32xf32>
    %41 = vector.broadcast %40 : vector<1x32xf32> to vector<8x32xf32>
    %42 = arith.addf %39, %41 : vector<8x32xf32>
    %cst_29 = arith.constant 0.00999999977 : f32
    %43 = vector.broadcast %cst_29 : f32 to vector<8x32xf32>
    %44 = arith.mulf %43, %42 : vector<8x32xf32>
    %45 = arith.maximumf %42, %44 : vector<8x32xf32>
    %46 = arith.truncf %45 : vector<8x32xf32> to vector<8x32xbf16>
    %c0_30 = arith.constant 0 : index
    %c0_31 = arith.constant 0 : index
    %47 = vector.load %arg12[%c0_30, %c0_31] : memref<32x128xbf16, #tpu.memory_space<vmem>>, vector<32x128xbf16>
    %cst_32 = arith.constant dense<0.000000e+00> : vector<8x128xf32>
    %48 = tpu.matmul %46, %47, %cst_32 {dimension_numbers = #tpu.dot_dimension_numbers<[1], [0], [0], [1], [0, 0, 1, 1], [], []>} : vector<8x32xbf16>, vector<32x128xbf16>, vector<8x128xf32> -> vector<8x128xf32>
    %c0_33 = arith.constant 0 : index
    %c0_34 = arith.constant 0 : index
    %49 = vector.load %arg13[%c0_33, %c0_34] : memref<1x128xf32, #tpu.memory_space<vmem>>, vector<1x128xf32>
    %50 = vector.broadcast %49 : vector<1x128xf32> to vector<8x128xf32>
    %51 = arith.addf %48, %50 : vector<8x128xf32>
    %c0_35 = arith.constant 0 : index
    %c0_36 = arith.constant 0 : index
    %52 = vector.load %arg14[%c0_35, %c0_36] : memref<8x128xf32, #tpu.memory_space<vmem>>, vector<8x128xf32>
    tpu.vector_store %arg14[%c0_35, %c0_36], %51 {strides = array<i32>} : memref<8x128xf32, #tpu.memory_space<vmem>>, vector<8x128xf32>,
    return
  }
  func.func @transform_0(%arg0: i32) -> (i32, i32) {
    %c0_i32 = arith.constant 0 : i32
    %c0_i32_0 = arith.constant 0 : i32
    return %arg0, %c0_i32 : i32, i32
  }
  func.func @transform_1(%arg0: i32) -> (i32, i32) {
    %c0_i32 = arith.constant 0 : i32
    %c0_i32_0 = arith.constant 0 : i32
    %c0_i32_1 = arith.constant 0 : i32
    return %c0_i32, %c0_i32_0 : i32, i32
  }
  func.func @transform_2(%arg0: i32) -> (i32, i32) {
    %c0_i32 = arith.constant 0 : i32
    %c0_i32_0 = arith.constant 0 : i32
    %c0_i32_1 = arith.constant 0 : i32
    return %c0_i32, %c0_i32_0 : i32, i32
  }
  func.func @transform_3(%arg0: i32) -> (i32, i32) {
    %c0_i32 = arith.constant 0 : i32
    %c0_i32_0 = arith.constant 0 : i32
    %c0_i32_1 = arith.constant 0 : i32
    return %c0_i32, %c0_i32_0 : i32, i32
  }
  func.func @transform_4(%arg0: i32) -> (i32, i32) {
    %c0_i32 = arith.constant 0 : i32
    %c0_i32_0 = arith.constant 0 : i32
    %c0_i32_1 = arith.constant 0 : i32
    return %c0_i32, %c0_i32_0 : i32, i32
  }
  func.func @transform_5(%arg0: i32) -> (i32, i32) {
    %c0_i32 = arith.constant 0 : i32
    %c0_i32_0 = arith.constant 0 : i32
    %c0_i32_1 = arith.constant 0 : i32
    return %c0_i32, %c0_i32_0 : i32, i32
  }
  func.func @transform_6(%arg0: i32) -> (i32, i32) {
    %c0_i32 = arith.constant 0 : i32
    %c0_i32_0 = arith.constant 0 : i32
    %c0_i32_1 = arith.constant 0 : i32
    return %c0_i32, %c0_i32_0 : i32, i32
  }
  func.func @transform_7(%arg0: i32) -> (i32, i32) {
    %c0_i32 = arith.constant 0 : i32
    %c0_i32_0 = arith.constant 0 : i32
    %c0_i32_1 = arith.constant 0 : i32
    return %c0_i32, %c0_i32_0 : i32, i32
  }
  func.func @transform_8(%arg0: i32) -> (i32, i32) {
    %c0_i32 = arith.constant 0 : i32
    %c0_i32_0 = arith.constant 0 : i32
    %c0_i32_1 = arith.constant 0 : i32
    return %c0_i32, %c0_i32_0 : i32, i32
  }
  func.func @transform_9(%arg0: i32) -> (i32, i32) {
    %c0_i32 = arith.constant 0 : i32
    %c0_i32_0 = arith.constant 0 : i32
    %c0_i32_1 = arith.constant 0 : i32
    return %c0_i32, %c0_i32_0 : i32, i32
  }
  func.func @transform_10(%arg0: i32) -> (i32, i32) {
    %c0_i32 = arith.constant 0 : i32
    %c0_i32_0 = arith.constant 0 : i32
    %c0_i32_1 = arith.constant 0 : i32
    return %c0_i32, %c0_i32_0 : i32, i32
  }
  func.func @transform_11(%arg0: i32) -> (i32, i32) {
    %c0_i32 = arith.constant 0 : i32
    %c0_i32_0 = arith.constant 0 : i32
    %c0_i32_1 = arith.constant 0 : i32
    return %c0_i32, %c0_i32_0 : i32, i32
  }
  func.func @transform_12(%arg0: i32) -> (i32, i32) {
    %c0_i32 = arith.constant 0 : i32
    %c0_i32_0 = arith.constant 0 : i32
    %c0_i32_1 = arith.constant 0 : i32
    return %c0_i32, %c0_i32_0 : i32, i32
  }
  func.func @transform_13(%arg0: i32) -> (i32, i32) {
    %c0_i32 = arith.constant 0 : i32
    %c0_i32_0 = arith.constant 0 : i32
    return %arg0, %c0_i32 : i32, i32
  }
}

</mosaic_0001>

<bundles_post_ra>
// kernel: _poker_net_forward_jit.1
= control target key start
LH: loop header
LB: loop body
LE: loop exit
PB: predicated region body
PF: predicated region fallthrough
CT: control target
= control target key end

     0   :  { %v669_v0 = vmov 0.0   ;;  %vm670_vm0 = vmmov 0   ;;  %vm184_vm1 = vcmask 261120   ;;  %vm408_vm2 = vcmask 523264   ;;  %s861_s1 = inlined_call_operand.vmem [shape: bf16[128,32], index: 1, kind: input, shape index: {}]   ;;  %s862_s0 = inlined_call_operand.vmem [shape: f32[8,128], index: 0, kind: input, shape index: {}]   ;;  %s863_s3 = inlined_call_operand.vmem [shape: bf16[32,32], index: 3, kind: input, shape index: {}]   ;;  %s864_s2 = inlined_call_operand.vmem [shape: f32[1,32], index: 2, kind: input, shape index: {}]   ;;  %s865_s5 = inlined_call_operand.vmem [shape: bf16[32,32], index: 5, kind: input, shape index: {}]   ;;  %s866_s4 = inlined_call_operand.vmem [shape: f32[1,32], index: 4, kind: input, shape index: {}]   ;;  %s867_s7 = inlined_call_operand.vmem [shape: bf16[32,64], index: 7, kind: input, shape index: {}]   ;;  %s868_s9 = inlined_call_operand.vmem [shape: bf16[64,32], index: 9, kind: input, shape index: {}]   ;;  %s869_s6 = inlined_call_operand.vmem [shape: f32[1,32], index: 6, kind: input, shape index: {}]   ;;  %s870_s8 = inlined_call_operand.vmem [shape: f32[1,64], index: 8, kind: input, shape index: {}]   ;;  %s871_s11 = inlined_call_operand.vmem [shape: bf16[32,128], index: 11, kind: input, shape index: {}]   ;;  %s872_s10 = inlined_call_operand.vmem [shape: f32[1,32], index: 10, kind: input, shape index: {}]   ;;  %s873_s12 = inlined_call_operand.vmem [shape: f32[1,128], index: 12, kind: input, shape index: {}]   ;;  %s874_s13 = inlined_call_operand.vmem [shape: f32[8,128], index: 13, kind: output, shape index: {}]  }
   0x1   :  { %583 = vmatprep.subr.bf16.mxu0 %v669_v0  ;;  %v649_v1 = vld [vmem:[%s861_s1] sm:$0xff]   ;;  %599 = vmatprep.mubr.msk.bf16.mxu0 %vm670_vm0, %v669_v0  ;;  %v650_v2 = vld [vmem:[%s861_s1 + $0x8] sm:$0xff]   ;;  %v651_v3 = vld [vmem:[%s861_s1 + $0x10] sm:$0xff]  }
   0x2   :  { %603 = vmatprep.subr.bf16.mxu1 %v669_v0  ;;  %607 = vmatprep.mubr.msk.bf16.mxu1 %vm670_vm0, %v669_v0  ;;  %v652_v4 = vld [vmem:[%s861_s1 + $0x18] sm:$0xff]   ;;  %v653_v5 = vld [vmem:[%s861_s1 + $0x20] sm:$0xff]   ;;  %v654_v6 = vld [vmem:[%s861_s1 + $0x28] sm:$0xff]  }
   0x3   :  { %584 = vmatpush3.bf16.msra.mxu0 %v649_v1  ;;  %v655_v7 = vld [vmem:[%s861_s1 + $0x30] sm:$0xff]   ;;  %v656_v8 = vld [vmem:[%s861_s1 + $0x38] sm:$0xff]   ;;  %v45_v9 = vld [vmem:[%s862_s0] sm:$0xff] }
   0x4   :  { %585 = vmatprep.subr.bf16.mxu0 %v669_v0  ;;  %v46_v10 = vpack.c.bf16 %v45_v9, %v45_v9  ;;  %v657_v11 = vld [vmem:[%s863_s3] sm:$0xff]   ;;  %v658_v12 = vld [vmem:[%s863_s3 + $0x8] sm:$0xff]   ;;  %v665_v46 = vld [vmem:[%s868_s9 + $0x10] sm:$0xff]  }
   0x5   :  { %604 = vmatpush3.bf16.msra.mxu1 %v657_v11  ;;  %v526_v13 = vld [vmem:[%s864_s2] ss:$0 sm:$0xff]  ;;  %v660_v23 = vld [vmem:[%s865_s5 + $0x8] sm:$0xff]   ;;  %v666_v47 = vld [vmem:[%s868_s9 + $0x18] sm:$0xff]  }
   0x6   :  { %605 = vmatprep.subr.bf16.mxu1 %v669_v0  ;;  %v659_v22 = vld [vmem:[%s865_s5] sm:$0xff]   ;;  %v662_v34 = vld [vmem:[%s867_s7 + $0x8] sm:$0xff]  }
   0x7   :  { %586 = vmatpush3.bf16.msra.mxu0 %v650_v2  ;;  %v535_v24 = vld [vmem:[%s866_s4] ss:$0 sm:$0xff]  ;;  %v664_v45 = vld [vmem:[%s868_s9 + $0x8] sm:$0xff]  }
   0x8   :  { %587 = vmatprep.subr.bf16.mxu0 %v669_v0  ;;  %v661_v33 = vld [vmem:[%s867_s7] sm:$0xff]   ;;  %v668_v58 = vld [vmem:[%s871_s11 + $0x8] sm:$0xff]  }
   0x9   :  { %606 = vmatpush3.bf16.msra.mxu1 %v658_v12  ;;  %v539_v35 = vld [vmem:[%s869_s6] ss:$0 sm:$0xff] }
   0xa   :  { %611 = vmatprep.subr.bf16.mxu1 %v669_v0  ;;  %v663_v43 = vld [vmem:[%s868_s9] sm:$0xff]  }
   0xb   :  { %588 = vmatpush3.bf16.msra.mxu0 %v651_v3  ;;  %v543_v48 = vld [vmem:[%s870_s8] ss:$0 sm:$0xff] }
   0xc   :  { %589 = vmatprep.subr.bf16.mxu0 %v669_v0  ;;  %v667_v57 = vld [vmem:[%s871_s11] sm:$0xff]  }
   0xd   :  { %v547_v59 = vld [vmem:[%s872_s10] ss:$0 sm:$0xff] }
   0xf   :  { %590 = vmatpush3.bf16.msra.mxu0 %v652_v4 }
  0x10   :  { %591 = vmatprep.subr.bf16.mxu0 %v669_v0 }
  0x13   :  { %592 = vmatpush3.bf16.msra.mxu0 %v653_v5 }
  0x14   :  { %593 = vmatprep.subr.bf16.mxu0 %v669_v0 }
  0x17   :  { %594 = vmatpush3.bf16.msra.mxu0 %v654_v6 }
  0x18   :  { %595 = vmatprep.subr.bf16.mxu0 %v669_v0 }
  0x1b   :  { %596 = vmatpush3.bf16.msra.mxu0 %v655_v7 }
  0x1c   :  { %597 = vmatprep.subr.bf16.mxu0 %v669_v0 }
  0x1f   :  { %598 = vmatpush3.bf16.msra.mxu0 %v656_v8 }
  0x20   :  { %639 = vmatprep.subr.bf16.mxu0 %v669_v0 }
  0x22   :  { %600 = vmatmul.mubr.bf16.vlgmr.msra.gmra.mrb[0].mxu0 %v46_v10 }
  0x23   :  { %643 = vmatprep.mubr.msk.bf16.mxu0 %vm670_vm0, %v669_v0  ;;  %640 = vmatpush3.bf16.msra.mxu0 %v667_v57 }
  0x24   :  { %641 = vmatprep.subr.bf16.mxu0 %v669_v0 }
  0x27   :  { %642 = vmatpush3.bf16.msra.mxu0 %v668_v58 }
  0xf5   :  { %v152_v14 = vpop.f32.mrb[0].mxu0 }
  0xf6   :  { %v153_v15 = vadd.f32 %v526_v13, %v152_v14  ;;  %v601_v16 = vpop.f32.mrb[1].mxu0 }
  0xf7   :  { %v155_v17 = vpop.f32.mrb[2].mxu0 }
  0xf8   :  { %v158_v18 = vmul.f32 0.01, %v153_v15  ;;  %v602_v19 = vpop.f32.mrb[3].mxu0 }
  0xfa   :  { %v159_v20 = vmax.f32 %v153_v15, %v158_v18 }
  0xfc   :  { %v160_v21 = vpack.c.bf16 %v159_v20, %v159_v20 }
  0xfe   :  { %608 = vmatmul.mubr.msk.bf16.vlgmr.msra.gmra.mrb[0].mxu1 %vm184_vm1, %v160_v21 }
  0xff   :  { %615 = vmatprep.mubr.msk.bf16.mxu1 %vm670_vm0, %v669_v0  ;;  %612 = vmatpush3.bf16.msra.mxu1 %v659_v22 }
 0x100   :  { %613 = vmatprep.subr.bf16.mxu1 %v669_v0 }
 0x103   :  { %614 = vmatpush3.bf16.msra.mxu1 %v660_v23 }
 0x104   :  { %619 = vmatprep.subr.bf16.mxu1 %v669_v0 }
 0x1d1   :  { %v222_v25 = vpop.f32.mrb[0].mxu1 }
 0x1d2   :  { %v223_v26 = vadd.f32 %v535_v24, %v222_v25  ;;  %v609_v27 = vpop.f32.mrb[1].mxu1 }
 0x1d3   :  { %v225_v28 = vpop.f32.mrb[2].mxu1 }
 0x1d4   :  { %v228_v29 = vmul.f32 0.01, %v223_v26  ;;  %v610_v30 = vpop.f32.mrb[3].mxu1 }
 0x1d6   :  { %v229_v31 = vmax.f32 %v223_v26, %v228_v29 }
 0x1d8   :  { %v230_v32 = vpack.c.bf16 %v229_v31, %v229_v31 }
 0x1da   :  { %616 = vmatmul.mubr.msk.bf16.vlgmr.msra.gmra.mrb[4].mxu1 %vm184_vm1, %v230_v32 }
 0x1db   :  { %623 = vmatprep.mubr.msk.bf16.mxu1 %vm670_vm0, %v669_v0  ;;  %620 = vmatpush3.bf16.msra.mxu1 %v661_v33 }
 0x1dc   :  { %621 = vmatprep.subr.bf16.mxu1 %v669_v0 }
 0x1df   :  { %622 = vmatpush3.bf16.msra.mxu1 %v662_v34 }
 0x1e0   :  { %627 = vmatprep.subr.bf16.mxu1 %v669_v0 }
 0x2ad   :  { %v291_v36 = vpop.f32.mrb[4].mxu1 }
 0x2ae   :  { %v292_v37 = vadd.f32 %v539_v35, %v291_v36  ;;  %v617_v38 = vpop.f32.mrb[5].mxu1 }
 0x2af   :  { %v294_v39 = vpop.f32.mrb[6].mxu1 }
 0x2b0   :  { %v297_v40 = vmul.f32 0.01, %v292_v37  ;;  %v618_v41 = vpop.f32.mrb[7].mxu1 }
 0x2b2   :  { %v298_v42 = vmax.f32 %v292_v37, %v297_v40 }
 0x2b4   :  { %v299_v44 = vpack.c.bf16 %v298_v42, %v298_v42 }
 0x2b6   :  { %624 = vmatmul.mubr.msk.bf16.vlgmr.msra.gmra.mrb[8].mxu1 %vm184_vm1, %v299_v44 }
 0x2b7   :  { %628 = vmatpush3.bf16.msra.mxu1 %v663_v43  ;;  %635 = vmatprep.mubr.msk.bf16.mxu1 %vm670_vm0, %v669_v0 }
 0x2b8   :  { %629 = vmatprep.subr.bf16.mxu1 %v669_v0 }
 0x2bb   :  { %630 = vmatpush3.bf16.msra.mxu1 %v664_v45 }
 0x2bc   :  { %631 = vmatprep.subr.bf16.mxu1 %v669_v0 }
 0x2bf   :  { %632 = vmatpush3.bf16.msra.mxu1 %v665_v46 }
 0x2c0   :  { %633 = vmatprep.subr.bf16.mxu1 %v669_v0  ;;  %v553_v0 = vld [vmem:[%s873_s12] ss:$0 sm:$0xff] }
 0x2c3   :  { %634 = vmatpush3.bf16.msra.mxu1 %v666_v47 }
 0x389   :  { %v360_v49 = vpop.f32.mrb[8].mxu1 }
 0x38a   :  { %v361_v50 = vadd.f32 %v543_v48, %v360_v49  ;;  %v625_v51 = vpop.f32.mrb[9].mxu1 }
 0x38b   :  { %v363_v52 = vpop.f32.mrb[10].mxu1 }
 0x38c   :  { %v366_v53 = vmul.f32 0.01, %v361_v50  ;;  %v626_v54 = vpop.f32.mrb[11].mxu1 }
 0x38e   :  { %v367_v55 = vmax.f32 %v361_v50, %v366_v53 }
 0x390   :  { %v368_v56 = vpack.c.bf16 %v367_v55, %v367_v55 }
 0x392   :  { %636 = vmatmul.mubr.msk.bf16.vlgmr.msra.gmra.mrb[12].mxu1 %vm408_vm2, %v368_v56 }
 0x465   :  { %v446_v60 = vpop.f32.mrb[12].mxu1 }
 0x466   :  { %v447_v61 = vadd.f32 %v547_v59, %v446_v60  ;;  %v637_v62 = vpop.f32.mrb[13].mxu1 }
 0x467   :  { %v449_v63 = vpop.f32.mrb[14].mxu1 }
 0x468   :  { %v452_v1 = vmul.f32 0.01, %v447_v61  ;;  %v638_v2 = vpop.f32.mrb[15].mxu1 }
 0x46a   :  { %v453_v3 = vmax.f32 %v447_v61, %v452_v1 }
 0x46c   :  { %v454_v4 = vpack.c.bf16 %v453_v3, %v453_v3 }
 0x46e   :  { %644 = vmatmul.mubr.msk.bf16.vlgmr.msra.gmra.mrb[4].mxu0 %vm184_vm1, %v454_v4 }
 0x541   :  { %v515_v5 = vpop.f32.mrb[4].mxu0 }
 0x542   :  { %v516_v6 = vadd.f32 %v553_v0, %v515_v5  ;;  %v645_v7 = vpop.f32.mrb[5].mxu0 }
 0x543   :  { %v518_v8 = vpop.f32.mrb[6].mxu0 }
 0x544   :  { %521 = vst [vmem:[%s874_s13] sm:$0xff] %v516_v6  ;;  %v646_v9 = vpop.f32.mrb[7].mxu0 }

</bundles_post_ra>
